<compile_context>
chip_gen: v5e
topology: v5e:2x2
jax: 0.10.0
libtpu: 0.0.40
codegen_flags: <defaults>
</compile_context>

<pallas_src>
import functools

import jax
import jax.numpy as jnp
from jax.experimental import pallas as pl
from jax.experimental.pallas import tpu as pltpu


def mycel_kernel(labels_ref, pred_ref, out_ref, *, n_total, tile_rows):
    i = pl.program_id(0)
    pred = pred_ref[...]                                    # (TN, C) native dtype
    labels = labels_ref[...]                                # (TN, 1) int32
    tn, c = pred.shape

    # One-hot select of the target-class probability, fused with a lane-axis
    # (axis=-1) reduce.  Exactly one element per row survives, so the sum is an
    # exact "gather" regardless of dtype.
    col = jax.lax.broadcasted_iota(jnp.int32, (tn, c), 1)
    hot = col == labels                                     # (TN, C) bool
    p_sel = jnp.sum(jnp.where(hot, pred, jnp.zeros_like(pred)),
                    axis=-1, keepdims=True)                 # (TN, 1) native dtype

    # Mask rows past the true N (partial last tile): force p_sel = 1.0 so the
    # per-row loss is exactly 0 and cannot be NaN/inf from garbage reads.
    row = i * tile_rows + jax.lax.broadcasted_iota(jnp.int32, (tn, 1), 0)
    valid = row < n_total
    p_sel_f32 = jnp.where(valid, p_sel.astype(jnp.float32), 1.0)

    out_ref[...] = -jnp.log(p_sel_f32)                      # (TN, 1) per-row loss


def _pick_tile_rows(n, c, itemsize, pred_budget_bytes=24 * 1024 * 1024):
    """Largest row tile whose double-buffered pred block fits the VMEM budget."""
    tn = pred_budget_bytes // (2 * c * itemsize)
    tn = max(8, min(512, (tn // 8) * 8))                    # multiple of 8 sublanes
    n_pad8 = ((n + 7) // 8) * 8
    return min(tn, n_pad8)


def mycel(pred, labels):
    """pred: (N, C) probabilities (any float dtype); labels: (N,) int class ids."""
    n, c = pred.shape
    labels2d = labels.astype(jnp.int32).reshape(n, 1)

    tn = _pick_tile_rows(n, c, jnp.dtype(pred.dtype).itemsize)
    num_tiles = pl.cdiv(n, tn)
    n_padded = num_tiles * tn                               # output fully in-bounds

    per_row = pl.pallas_call(
        functools.partial(mycel_kernel, n_total=n, tile_rows=tn),
        out_shape=jax.ShapeDtypeStruct((n_padded, 1), jnp.float32),
        grid_spec=pltpu.PrefetchScalarGridSpec(
            num_scalar_prefetch=0,
            grid=(num_tiles,),
            in_specs=[
                pl.BlockSpec((tn, 1), lambda i: (i, 0)),    # labels row tile
                pl.BlockSpec((tn, c), lambda i: (i, 0)),    # pred   row tile
            ],
            out_specs=pl.BlockSpec((tn, 1), lambda i: (i, 0)),
        ),
        compiler_params=pltpu.CompilerParams(
            dimension_semantics=("parallel",),              # independent row tiles
            vmem_limit_bytes=32 * 1024 * 1024,
        ),
    )(labels2d, pred)

    # Final tiny reduction in XLA; divide by the *global* N exactly once.
    return jnp.sum(per_row) / jnp.float32(n)


if __name__ == "__main__":
    key = jax.random.PRNGKey(0)
    k1, k2, k3, k4 = jax.random.split(key, 4)

    # Case 1: small, tile-aligned (N multiple of 8).
    N1, C1 = 8, 32
    pred1 = jax.nn.softmax(jax.random.normal(k1, (N1, C1), dtype=jnp.float32), axis=-1)
    labels1 = jax.random.randint(k2, (N1,), 0, C1, dtype=jnp.int32)
    loss1 = mycel(pred1, labels1)
    jax.block_until_ready(loss1)
    ref1 = -jnp.mean(jnp.log(pred1[jnp.arange(N1), labels1]))
    assert jnp.allclose(loss1, ref1, rtol=1e-5, atol=1e-5), (loss1, ref1)

    # Case 2: N not a multiple of the tile -> exercises the remainder masking.
    N2, C2 = 20, 32
    pred2 = jax.nn.softmax(jax.random.normal(k3, (N2, C2), dtype=jnp.float32), axis=-1)
    labels2 = jax.random.randint(k4, (N2,), 0, C2, dtype=jnp.int32)
    loss2 = mycel(pred2, labels2)
    jax.block_until_ready(loss2)
    ref2 = -jnp.mean(jnp.log(pred2[jnp.arange(N2), labels2]))
    assert jnp.allclose(loss2, ref2, rtol=1e-5, atol=1e-5), (loss2, ref2)

    print("KERNEL_OK")
</pallas_src>

<mosaic_0001>
module attributes {stable_mosaic.version = 11 : i64} {
  func.func @mycel_kernel(%arg0: i32, %arg1: memref<8x1xi32, #tpu.memory_space<vmem>>, %arg2: memref<8x32xf32, #tpu.memory_space<vmem>>, %arg3: memref<8x1xf32, #tpu.memory_space<vmem>>) attributes {dimension_semantics = [#tpu.dimension_semantics<parallel>], iteration_bounds = array<i64: 1>, scalar_prefetch = 0 : i64, scratch_operands = 0 : i64, tpu.core_type = #tpu.core_type<tc>, window_params = [{transform_indices = @transform_0, window_bounds = array<i64: 8, 1>}, {transform_indices = @transform_1, window_bounds = array<i64: 8, 32>}, {transform_indices = @transform_2, window_bounds = array<i64: 8, 1>}]} {
    %c0 = arith.constant 0 : index
    %c0_0 = arith.constant 0 : index
    %0 = vector.load %arg2[%c0, %c0_0] : memref<8x32xf32, #tpu.memory_space<vmem>>, vector<8x32xf32>
    %c0_1 = arith.constant 0 : index
    %c0_2 = arith.constant 0 : index
    %1 = vector.load %arg1[%c0_1, %c0_2] : memref<8x1xi32, #tpu.memory_space<vmem>>, vector<8x1xi32>
    %2 = tpu.iota {dimensions = array<i32: 1>} : vector<8x32xi32>
    %3 = vector.broadcast %1 : vector<8x1xi32> to vector<8x32xi32>
    %4 = arith.cmpi eq, %2, %3 : vector<8x32xi32>
    %cst = arith.constant 0.000000e+00 : f32
    %5 = vector.broadcast %cst : f32 to vector<8x32xf32>
    %6 = arith.select %4, %0, %5 : vector<8x32xi1>, vector<8x32xf32>
    %cst_3 = arith.constant dense<0.000000e+00> : vector<8xf32>
    %7 = vector.multi_reduction <add>, %6, %cst_3 [1] : vector<8x32xf32> to vector<8xf32>
    %8 = vector.shape_cast %7 : vector<8xf32> to vector<8x1xf32>
    %c8_i32 = arith.constant 8 : i32
    %9 = arith.muli %arg0, %c8_i32 : i32
    %10 = tpu.iota {dimensions = array<i32: 0>} : vector<8x1xi32>
    %11 = vector.broadcast %9 : i32 to vector<8x1xi32>
    %12 = arith.addi %11, %10 : vector<8x1xi32>
    %c8_i32_4 = arith.constant 8 : i32
    %13 = vector.broadcast %c8_i32_4 : i32 to vector<8x1xi32>
    %14 = arith.cmpi slt, %12, %13 : vector<8x1xi32>
    %cst_5 = arith.constant 1.000000e+00 : f32
    %15 = vector.broadcast %cst_5 : f32 to vector<8x1xf32>
    %16 = arith.select %14, %8, %15 : vector<8x1xi1>, vector<8x1xf32>
    %17 = math.log %16 : vector<8x1xf32>
    %cst_6 = arith.constant 0.000000e+00 : f32
    %18 = vector.broadcast %cst_6 : f32 to vector<8x1xf32>
    %19 = arith.subf %18, %17 : vector<8x1xf32>
    %c0_7 = arith.constant 0 : index
    %c0_8 = arith.constant 0 : index
    %20 = vector.load %arg3[%c0_7, %c0_8] : memref<8x1xf32, #tpu.memory_space<vmem>>, vector<8x1xf32>
    tpu.vector_store %arg3[%c0_7, %c0_8], %19 {strides = array<i32>} : memref<8x1xf32, #tpu.memory_space<vmem>>, vector<8x1xf32>,
    return
  }
  func.func @transform_0(%arg0: i32) -> (i32, i32) {
    %c0_i32 = arith.constant 0 : i32
    %c0_i32_0 = arith.constant 0 : i32
    return %arg0, %c0_i32 : i32, i32
  }
  func.func @transform_1(%arg0: i32) -> (i32, i32) {
    %c0_i32 = arith.constant 0 : i32
    %c0_i32_0 = arith.constant 0 : i32
    return %arg0, %c0_i32 : i32, i32
  }
  func.func @transform_2(%arg0: i32) -> (i32, i32) {
    %c0_i32 = arith.constant 0 : i32
    %c0_i32_0 = arith.constant 0 : i32
    return %arg0, %c0_i32 : i32, i32
  }
}

</mosaic_0001>

<bundles_post_ra>
// kernel: tpu_custom_call.1
= control target key start
LH: loop header
LB: loop body
LE: loop exit
PB: predicated region body
PF: predicated region fallthrough
CT: control target
= control target key end

     0   :  { %v44_v0 = vmov 0   ;;  %v13_v2 = vlaneseq  ;;  %vm20_vm0 = vcmask 261120   ;;  %vm34_vm2 = vcmask 7168   ;;  %s69_s0 = inlined_call_operand.vmem [shape: s32[8,1], index: 0, kind: input, shape index: {}]   ;;  %s70_s1 = inlined_call_operand.vmem [shape: f32[8,32], index: 1, kind: input, shape index: {}]   ;;  %s71_s2 = inlined_call_operand.vmem [shape: f32[8,1], index: 2, kind: output, shape index: {}]  }
   0x1   :  { %41 = vset.pattern.permute.xlu0 %v44_v0  ;;  %v12_v1 = vld [vmem:[%s69_s0] sm:$0xff] }
   0x2   :  { %16 = vperm.xlu0 %41, %v12_v1   ;;  %v14_v3 = vand.u32 127, %v13_v2  ;;  %v11_v4 = vld [vmem:[%s70_s1] sm:$0xff] }
  0x74   :  { %v17_v5 = vpop.permute.xlu0 %16 }
  0x75   :  { %vm18_vm1 = vcmp.eq.s32.totalorder %v14_v3, %v17_v5 }
  0x76   :  { %v19_v6 = vsel %vm18_vm1, %v11_v4, 0.0 }
  0x77   :  { %v21_v7 = vsel %vm20_vm0, %v19_v6, 0.0 }
  0x78   :  { %22 = vadd.xlane.f32.xlu0 %v21_v7 }
  0xeb   :  { %v23_v8 = vpop.xlane.xlu0 %22 }
  0xec   :  { %42 = vlog2.f32 %v23_v8 }
  0xf2   :  { %v43_v9 = vpop.eup %42 }
  0xf3   :  { %v32_v10 = vmul.f32 0.6931472, %v43_v9 }
  0xf5   :  { %v33_v11 = vsub.f32 0.0, %v32_v10 }
  0xf7   :  { %35 = vst.msk [vmem:[%s71_s2] sm:$0xff] %vm34_vm2, %v33_v11 }

</bundles_post_ra>
